<compile_context>
chip_gen: v6e
topology: v6e:2x2x1
jax: 0.10.0
libtpu: 0.0.40
codegen_flags: <defaults>
</compile_context>

<pallas_src>
import functools

import jax
import jax.numpy as jnp
from jax.experimental import pallas as pl
from jax.experimental.pallas import tpu as pltpu


# ------------------------------ kernels -------------------------------------


def _layer_norm_f32(x, gamma, beta, eps):
    # BertLayerNorm, two-pass form (numerically safe; reductions are cheap here).
    u = jnp.mean(x, axis=-1, keepdims=True)
    xc = x - u
    var = jnp.mean(xc * xc, axis=-1, keepdims=True)
    inv = jax.lax.rsqrt(var + jnp.float32(eps))
    return xc * inv * gamma + beta


def _vis_pos_ln_default_kernel(x_ref, pos_ref, gamma_ref, beta_ref, o_ref, *, eps):
    # x/o: (TB, S, H) tiles; pos: (S, H) broadcast over batch; gamma/beta: (1, H).
    x = x_ref[...].astype(jnp.float32) + pos_ref[...].astype(jnp.float32)
    y = _layer_norm_f32(x, gamma_ref[...].astype(jnp.float32),
                        beta_ref[...].astype(jnp.float32), eps)
    o_ref[...] = y.astype(o_ref.dtype)


def _vis_pos_ln_ids_kernel(x_ref, ids_ref, tbl_ref, gamma_ref, beta_ref, o_ref, *, eps):
    # x/o: (TR, H) row tiles; ids: (TR, 1) int32; tbl: (n_pos, H) resident in VMEM.
    # Per-row gather = one-hot(ids) @ table on the MXU (idle in this kernel), so no
    # [B, S, H] position-embedding array is ever written to / read from HBM.
    n_pos = tbl_ref.shape[0]
    tr = ids_ref.shape[0]
    iota = jax.lax.broadcasted_iota(jnp.int32, (tr, n_pos), 1)
    onehot = (ids_ref[...] == iota).astype(jnp.float32)            # (TR, n_pos)
    pos = jnp.dot(onehot, tbl_ref[...].astype(jnp.float32),
                  preferred_element_type=jnp.float32)              # (TR, H)
    x = x_ref[...].astype(jnp.float32) + pos
    y = _layer_norm_f32(x, gamma_ref[...].astype(jnp.float32),
                        beta_ref[...].astype(jnp.float32), eps)
    o_ref[...] = y.astype(o_ref.dtype)


# --------------------------- tiling heuristics -------------------------------

_VMEM_BUDGET = 24 << 20     # per-step working set cap (fits v7x's 64 MiB VMEM)
_TARGET_BLOCK = 4 << 20     # ~4 MiB input blocks amortize ~0.35 us/step overhead
_MIN_STEPS_BYTES = 2 << 20  # want >=4 grid steps once total work exceeds this


def _pick_batch_tile(B, S, H, itemsize):
    """Batch tile for the default-(arange) path's (TB, S, H) blocks."""
    row = S * H * itemsize          # input bytes per batch element
    f32_row = S * H * 4             # fp32 working copy inside the kernel
    per_b = 4 * row + 2 * f32_row   # 2x in + 2x out double buffers + working set
    tb = min(B,
             max(1, _VMEM_BUDGET // per_b),
             max(1, _TARGET_BLOCK // max(row, 1)))
    if B * row >= _MIN_STEPS_BYTES:
        # >=4 grid steps so DMA overlaps compute (and v7x's 2 TCs get >=2 each).
        tb = min(tb, max(1, B // 4))
    return max(1, tb)


def _pick_row_tile(n_rows, H, itemsize):
    """Row tile for the explicit-ids path's flattened (TR, H) blocks."""
    sub = 8 * max(1, 4 // itemsize)     # native sublane count: f32->8, bf16->16, i8->32
    row = H * itemsize
    f32_row = H * 4
    per_r = 4 * row + 2 * f32_row
    tr = min(max(sub, _VMEM_BUDGET // per_r),
             max(sub, _TARGET_BLOCK // max(row, 1)))
    if n_rows * row >= _MIN_STEPS_BYTES:
        tr = min(tr, max(sub, n_rows // 4))
    tr = max(sub, (tr // sub) * sub)    # keep sublane-aligned block shape
    if tr >= n_rows:
        tr = n_rows                     # block == full dim is always legal
    return tr


def _compiler_params(in_bytes, out_bytes, f32_bytes, extra_bytes=0):
    params = {"dimension_semantics": ("parallel",)}
    need = 2 * in_bytes + 2 * out_bytes + 2 * f32_bytes + extra_bytes
    if need > (12 << 20):
        # Raise the scoped-VMEM limit only when the tiles actually need it;
        # cap below v7x's 64 MiB physical VMEM.
        params["vmem_limit_bytes"] = int(min(48 << 20, need + (8 << 20)))
    return pltpu.CompilerParams(**params)


# ------------------------------- wrapper -------------------------------------


def vis_pos_embeddings(input_vis_feats, pos_table, gamma, beta,
                       position_ids=None, eps=1e-12):
    """Forward pass of VisPosEmbeddings.

    input_vis_feats: [B, S, H]; pos_table: [24, H]; gamma/beta: [H];
    position_ids: optional [B, S] (or [S]) int ids into the 24-row table.
    """
    B, S, H = input_vis_feats.shape
    n_pos, Hp = pos_table.shape
    assert Hp == H, "pos_table hidden size mismatch"

    gamma2 = gamma.reshape(1, H)
    beta2 = beta.reshape(1, H)
    itemsize = jnp.dtype(input_vis_feats.dtype).itemsize

    if position_ids is None:
        # Default arange(S) positions: one (S, H) table slice, constant index_map,
        # broadcast across every batch tile inside the kernel.
        if S > n_pos:
            raise ValueError(f"seq_length {S} exceeds position table size {n_pos}")
        TB = _pick_batch_tile(B, S, H, itemsize)
        grid = (pl.cdiv(B, TB),)              # partial edge block handled by Pallas
        pos = pos_table[:S]
        x_spec = pl.BlockSpec((TB, S, H), lambda i: (i, 0, 0))
        in_bytes = TB * S * H * itemsize
        f32_bytes = TB * S * H * 4
        extra = 2 * (S * H + 2 * H) * 4       # pos / gamma / beta buffers
        kernel = functools.partial(_vis_pos_ln_default_kernel, eps=eps)
        return pl.pallas_call(
            kernel,
            out_shape=jax.ShapeDtypeStruct((B, S, H), input_vis_feats.dtype),
            grid=grid,
            in_specs=[
                x_spec,
                pl.BlockSpec((S, H), lambda i: (0, 0)),   # pos slice (broadcast)
                pl.BlockSpec((1, H), lambda i: (0, 0)),   # gamma
                pl.BlockSpec((1, H), lambda i: (0, 0)),   # beta
            ],
            out_specs=x_spec,
            compiler_params=_compiler_params(in_bytes, in_bytes, f32_bytes, extra),
        )(input_vis_feats, pos, gamma2, beta2)

    # Explicit position_ids: flatten to rows, gather in-kernel from the VMEM-resident
    # (24, H) table. Only x, y and the tiny ids/table move through HBM (~2N bytes).
    # TODO(synk): nn.Embedding raises on out-of-range ids; here an out-of-range id
    # yields a zero position embedding instead of an error.
    ids = jnp.asarray(position_ids, dtype=jnp.int32)
    if ids.ndim == 1:
        ids = jnp.broadcast_to(ids[None, :], (B, S))
    n_rows = B * S
    x2 = input_vis_feats.reshape(n_rows, H)
    ids2 = ids.reshape(n_rows, 1)
    TR = _pick_row_tile(n_rows, H, itemsize)
    grid = (pl.cdiv(n_rows, TR),)
    x_spec = pl.BlockSpec((TR, H), lambda i: (i, 0))
    in_bytes = TR * H * itemsize
    f32_bytes = TR * H * 4
    extra = 2 * (n_pos * H + 2 * H) * 4 + TR * n_pos * 4   # table/gamma/beta + one-hot
    kernel = functools.partial(_vis_pos_ln_ids_kernel, eps=eps)
    out2 = pl.pallas_call(
        kernel,
        out_shape=jax.ShapeDtypeStruct((n_rows, H), input_vis_feats.dtype),
        grid=grid,
        in_specs=[
            x_spec,
            pl.BlockSpec((TR, 1), lambda i: (i, 0)),       # ids (rows)
            pl.BlockSpec((n_pos, H), lambda i: (0, 0)),    # full 24-row table
            pl.BlockSpec((1, H), lambda i: (0, 0)),        # gamma
            pl.BlockSpec((1, H), lambda i: (0, 0)),        # beta
        ],
        out_specs=x_spec,
        compiler_params=_compiler_params(in_bytes, in_bytes, f32_bytes, extra),
    )(x2, ids2, pos_table, gamma2, beta2)
    return out2.reshape(B, S, H)


# ------------------------------ reference ------------------------------------


def _reference(input_vis_feats, pos_table, gamma, beta, position_ids=None, eps=1e-12):
    B, S, H = input_vis_feats.shape
    if position_ids is None:
        position_ids = jnp.broadcast_to(jnp.arange(S)[None, :], (B, S))
    x = input_vis_feats + jnp.take(pos_table, position_ids, axis=0)
    u = jnp.mean(x, axis=-1, keepdims=True)
    s = jnp.mean((x - u) ** 2, axis=-1, keepdims=True)
    return gamma * (x - u) / jnp.sqrt(s + eps) + beta


if __name__ == "__main__":
    # Small shapes consistent with the module; H lane-dense, S <= 24 (table size).
    B, S, H = 2, 8, 128
    eps = 1e-12

    key = jax.random.PRNGKey(0)
    k_x, k_pos, k_g, k_b, k_ids = jax.random.split(key, 5)

    x = jax.random.normal(k_x, (B, S, H), dtype=jnp.float32)
    pos_table = 0.02 * jax.random.normal(k_pos, (24, H), dtype=jnp.float32)
    gamma = jnp.ones((H,), jnp.float32) + 0.01 * jax.random.normal(k_g, (H,), jnp.float32)
    beta = 0.01 * jax.random.normal(k_b, (H,), dtype=jnp.float32)

    # Default (position_ids=None) path.
    out = jax.block_until_ready(vis_pos_embeddings(x, pos_table, gamma, beta, eps=eps))
    ref = _reference(x, pos_table, gamma, beta, eps=eps)
    assert out.shape == (B, S, H)
    assert jnp.allclose(out, ref, atol=1e-4, rtol=1e-4), "mismatch vs reference (default)"

    # Explicit position_ids path (in-kernel gather, no HBM pos materialization).
    pos_ids = jax.random.randint(k_ids, (B, S), 0, 24, dtype=jnp.int32)
    out2 = jax.block_until_ready(
        vis_pos_embeddings(x, pos_table, gamma, beta, position_ids=pos_ids, eps=eps))
    ref2 = _reference(x, pos_table, gamma, beta, position_ids=pos_ids, eps=eps)
    assert jnp.allclose(out2, ref2, atol=1e-4, rtol=1e-4), "mismatch vs reference (ids)"

    print("KERNEL_OK")
</pallas_src>

<mosaic_0001>
module attributes {stable_mosaic.version = 11 : i64} {
  func.func @_vis_pos_ln_default_kernel(%arg0: i32, %arg1: memref<2x8x128xf32, #tpu.memory_space<vmem>>, %arg2: memref<8x128xf32, #tpu.memory_space<vmem>>, %arg3: memref<1x128xf32, #tpu.memory_space<vmem>>, %arg4: memref<1x128xf32, #tpu.memory_space<vmem>>, %arg5: memref<2x8x128xf32, #tpu.memory_space<vmem>>) attributes {dimension_semantics = [#tpu.dimension_semantics<parallel>], iteration_bounds = array<i64: 1>, scalar_prefetch = 0 : i64, scratch_operands = 0 : i64, tpu.core_type = #tpu.core_type<tc>, window_params = [{transform_indices = @transform_0, window_bounds = array<i64: 2, 8, 128>}, {pipeline_mode = #tpu.pipeline_mode<synchronous>, transform_indices = @transform_1, window_bounds = array<i64: 8, 128>}, {pipeline_mode = #tpu.pipeline_mode<synchronous>, transform_indices = @transform_2, window_bounds = array<i64: 1, 128>}, {pipeline_mode = #tpu.pipeline_mode<synchronous>, transform_indices = @transform_3, window_bounds = array<i64: 1, 128>}, {transform_indices = @transform_4, window_bounds = array<i64: 2, 8, 128>}]} {
    %c0 = arith.constant 0 : index
    %c0_0 = arith.constant 0 : index
    %c0_1 = arith.constant 0 : index
    %0 = vector.load %arg1[%c0, %c0_0, %c0_1] : memref<2x8x128xf32, #tpu.memory_space<vmem>>, vector<2x8x128xf32>
    %c0_2 = arith.constant 0 : index
    %c0_3 = arith.constant 0 : index
    %1 = vector.load %arg2[%c0_2, %c0_3] : memref<8x128xf32, #tpu.memory_space<vmem>>, vector<8x128xf32>
    %2 = vector.shape_cast %1 : vector<8x128xf32> to vector<1x8x128xf32>
    %3 = vector.broadcast %2 : vector<1x8x128xf32> to vector<2x8x128xf32>
    %4 = arith.addf %0, %3 : vector<2x8x128xf32>
    %c0_4 = arith.constant 0 : index
    %c0_5 = arith.constant 0 : index
    %5 = vector.load %arg3[%c0_4, %c0_5] : memref<1x128xf32, #tpu.memory_space<vmem>>, vector<1x128xf32>
    %c0_6 = arith.constant 0 : index
    %c0_7 = arith.constant 0 : index
    %6 = vector.load %arg4[%c0_6, %c0_7] : memref<1x128xf32, #tpu.memory_space<vmem>>, vector<1x128xf32>
    %cst = arith.constant dense<0.000000e+00> : vector<2x8xf32>
    %7 = vector.multi_reduction <add>, %4, %cst [2] : vector<2x8x128xf32> to vector<2x8xf32>
    %8 = vector.shape_cast %7 : vector<2x8xf32> to vector<2x8x1xf32>
    %cst_8 = arith.constant 1.280000e+02 : f32
    %9 = vector.broadcast %cst_8 : f32 to vector<2x8x1xf32>
    %10 = arith.divf %8, %9 : vector<2x8x1xf32>
    %11 = vector.broadcast %10 : vector<2x8x1xf32> to vector<2x8x128xf32>
    %12 = arith.subf %4, %11 : vector<2x8x128xf32>
    %13 = arith.mulf %12, %12 : vector<2x8x128xf32>
    %cst_9 = arith.constant dense<0.000000e+00> : vector<2x8xf32>
    %14 = vector.multi_reduction <add>, %13, %cst_9 [2] : vector<2x8x128xf32> to vector<2x8xf32>
    %15 = vector.shape_cast %14 : vector<2x8xf32> to vector<2x8x1xf32>
    %cst_10 = arith.constant 1.280000e+02 : f32
    %16 = vector.broadcast %cst_10 : f32 to vector<2x8x1xf32>
    %17 = arith.divf %15, %16 : vector<2x8x1xf32>
    %cst_11 = arith.constant 9.99999996E-13 : f32
    %18 = vector.broadcast %cst_11 : f32 to vector<2x8x1xf32>
    %19 = arith.addf %17, %18 : vector<2x8x1xf32>
    %20 = math.rsqrt %19 : vector<2x8x1xf32>
    %21 = vector.broadcast %20 : vector<2x8x1xf32> to vector<2x8x128xf32>
    %22 = arith.mulf %12, %21 : vector<2x8x128xf32>
    %23 = vector.shape_cast %5 : vector<1x128xf32> to vector<1x1x128xf32>
    %24 = vector.broadcast %23 : vector<1x1x128xf32> to vector<2x8x128xf32>
    %25 = arith.mulf %22, %24 : vector<2x8x128xf32>
    %26 = vector.shape_cast %6 : vector<1x128xf32> to vector<1x1x128xf32>
    %27 = vector.broadcast %26 : vector<1x1x128xf32> to vector<2x8x128xf32>
    %28 = arith.addf %25, %27 : vector<2x8x128xf32>
    %c0_12 = arith.constant 0 : index
    %c0_13 = arith.constant 0 : index
    %c0_14 = arith.constant 0 : index
    %29 = vector.load %arg5[%c0_12, %c0_13, %c0_14] : memref<2x8x128xf32, #tpu.memory_space<vmem>>, vector<2x8x128xf32>
    tpu.vector_store %arg5[%c0_12, %c0_13, %c0_14], %28 {strides = array<i32>} : memref<2x8x128xf32, #tpu.memory_space<vmem>>, vector<2x8x128xf32>,
    return
  }
  func.func @transform_0(%arg0: i32) -> (i32, i32, i32) {
    %c0_i32 = arith.constant 0 : i32
    %c0_i32_0 = arith.constant 0 : i32
    %c0_i32_1 = arith.constant 0 : i32
    return %arg0, %c0_i32, %c0_i32_0 : i32, i32, i32
  }
  func.func @transform_1(%arg0: i32) -> (i32, i32) {
    %c0_i32 = arith.constant 0 : i32
    %c0_i32_0 = arith.constant 0 : i32
    %c0_i32_1 = arith.constant 0 : i32
    return %c0_i32, %c0_i32_0 : i32, i32
  }
  func.func @transform_2(%arg0: i32) -> (i32, i32) {
    %c0_i32 = arith.constant 0 : i32
    %c0_i32_0 = arith.constant 0 : i32
    %c0_i32_1 = arith.constant 0 : i32
    return %c0_i32, %c0_i32_0 : i32, i32
  }
  func.func @transform_3(%arg0: i32) -> (i32, i32) {
    %c0_i32 = arith.constant 0 : i32
    %c0_i32_0 = arith.constant 0 : i32
    %c0_i32_1 = arith.constant 0 : i32
    return %c0_i32, %c0_i32_0 : i32, i32
  }
  func.func @transform_4(%arg0: i32) -> (i32, i32, i32) {
    %c0_i32 = arith.constant 0 : i32
    %c0_i32_0 = arith.constant 0 : i32
    %c0_i32_1 = arith.constant 0 : i32
    return %arg0, %c0_i32, %c0_i32_0 : i32, i32, i32
  }
}

</mosaic_0001>

<bundles_post_ra>
// kernel: tpu_custom_call.1
= control target key start
LH: loop header
LB: loop body
LE: loop exit
PB: predicated region body
PF: predicated region fallthrough
CT: control target
= control target key end

     0   :  { %9 = vsyncpa [#allocation3], 0  ;;  %s238_s0 = inlined_call_operand.hbm [shape: f32[2,8,128], index: 0, kind: input, shape index: {}]   ;;  %s239_s1 = inlined_call_operand.hbm [shape: f32[8,128], index: 1, kind: input, shape index: {}]   ;;  %s240_s2 = inlined_call_operand.vmem [shape: f32[1,128], index: 2, kind: input, shape index: {}]   ;;  %s241_s3 = inlined_call_operand.vmem [shape: f32[1,128], index: 3, kind: input, shape index: {}]   ;;  %s242_s4 = inlined_call_operand.hbm [shape: f32[2,8,128], index: 4, kind: output, shape index: {}]  }
   0x1   :  { %10 = vsyncpa [#allocation6], 0 }
   0x2   :  { %11 = vsyncpa [#allocation4], 0  ;;  %s187_s15 = smov [#allocation2]  }
   0x3   :  { %s17_s16 = sshll.u32 %s187_s15, 4  ;;  %s18_s16 = int_to_ptr.vmem [resolvable:$true] %s17_s16 }
   0x4   :  { %s129_s17 = scalar_lea.vmem %s18_s16, 256  ;;  %p134_p1 = scmp.lt.s32.totalorder %s18_s16, %s18_s16 }
   0x5   :  { %p130_p0 = scmp.ne.s32.totalorder %s18_s16, %s129_s17  ;;  %p135_p2 = scmp.lt.s32.totalorder %s129_s17, %s129_s17 }
   0x7   :  { %p136_p3 = por %p135_p2, %p134_p1 }
   0x9   :  { %p137_p4 = pnand %p136_p3, %p130_p0 }
   0xb   :  { %140 = shalt.err (!%p137_p4)
}
   0xc   :  { %s188_s18 = smov 128   ;;  %s189_s19 = smov 8  }
   0xd   :  { %23 = dma.hbm_to_vmem [thread:$0]  %s238_s0, 256, %s18_s16, [#allocation3], %s188_s18, %s188_s18, %s189_s19  }
   0xe   :  { %s190_s22 = smov [#allocation5]  }
   0xf   :  { %s30_s23 = sshll.u32 %s190_s22, 4  ;;  %s31_s23 = int_to_ptr.vmem [resolvable:$true] %s30_s23 }
  0x10   :  { %s149_s24 = scalar_lea.vmem %s31_s23, 128  ;;  %p154_p6 = scmp.lt.s32.totalorder %s31_s23, %s31_s23 }
  0x11   :  { %p150_p5 = scmp.ne.s32.totalorder %s31_s23, %s149_s24  ;;  %p155_p7 = scmp.lt.s32.totalorder %s149_s24, %s149_s24 }
  0x13   :  { %p156_p8 = por %p155_p7, %p154_p6 }
  0x15   :  { %p157_p9 = pnand %p156_p8, %p150_p5 }
  0x17   :  { %160 = shalt.err (!%p157_p9)
}
  0x18   :  { %33 = dma.hbm_to_vmem [thread:$0]  %s239_s1, 128, %s31_s23, [#allocation6]  }
  0x19   :  { %181 = dma.done.wait [#allocation3], 256  }
  0x1a   :  { %182 = vsyncadd [#allocation3], 4294967040 }
  0x1b   :  { %183 = dma.done.wait [#allocation6], 128  }
  0x1c   :  { %184 = vsyncadd [#allocation6], 4294967168  ;;  %v44_v0 = vld [vmem:[#allocation2] sm:$0xff]  ;;  %v46_v1 = vld [vmem:[#allocation5] sm:$0xff]  ;;  %s191_s29 = smov [#allocation7]  }
  0x1d   :  { %v45_v2 = vld [vmem:[#allocation2 + $0x8] sm:$0xff]  ;;  %v47_v3 = vadd.f32 %v46_v1, %v44_v0  ;;  %v110_v20 = vld [vmem:[%s240_s2] ss:$0 sm:$0xff]  ;;  %s97_s30 = sshll.u32 %s191_s29, 4  ;;  %s98_s30 = int_to_ptr.vmem [resolvable:$true] %s97_s30 }
  0x1e   :  { %v48_v4 = vadd.f32 %v46_v1, %v45_v2  ;;  %v111_v22 = vld [vmem:[%s241_s3] ss:$0 sm:$0xff]  ;;  %s161_s5 = scalar_lea.vmem %s98_s30, 256  ;;  %p166_p11 = scmp.lt.s32.totalorder %s98_s30, %s98_s30 }
  0x1f   :  { %51 = vadd.xlane.f32.xlu0 %v47_v3  ;;  %p162_p10 = scmp.ne.s32.totalorder %s98_s30, %s161_s5  ;;  %p167_p12 = scmp.lt.s32.totalorder %s161_s5, %s161_s5 }
  0x21   :  { %p168_p13 = por %p167_p12, %p166_p11 }
  0x23   :  { %53 = vadd.xlane.f32.xlu0 %v48_v4  ;;  %p169_p0 = pnand %p168_p13, %p162_p10 }
  0xa8   :  { %v52_v5 = vpop.xlane.xlu0 %51 }
  0xa9   :  { %v56_v6 = vmul.f32 0.0078125, %v52_v5 }
  0xab   :  { %v58_v7 = vsub.f32 %v47_v3, %v56_v6 }
  0xac   :  { %v54_v8 = vpop.xlane.xlu0 %53 }
  0xad   :  { %v57_v9 = vmul.f32 0.0078125, %v54_v8  ;;  %v60_v10 = vmul.f32 %v58_v7, %v58_v7 }
  0xaf   :  { %v59_v11 = vsub.f32 %v48_v4, %v57_v9  ;;  %62 = vadd.xlane.f32.xlu1 %v60_v10 }
  0xb1   :  { %v61_v12 = vmul.f32 %v59_v11, %v59_v11 }
  0xb3   :  { %64 = vadd.xlane.f32.xlu1 %v61_v12 }
 0x138   :  { %v63_v13 = vpop.xlane.xlu1 %62 }
 0x139   :  { %v66_v14 = vmul.f32 0.0078125, %v63_v13 }
 0x13b   :  { %v68_v15 = vadd.f32 1e-12, %v66_v14 }
 0x13c   :  { %v65_v16 = vpop.xlane.xlu1 %64 }
 0x13d   :  { %117 = vrsqrt.f32 %v68_v15  ;;  %v67_v17 = vmul.f32 0.0078125, %v65_v16 }
 0x13f   :  { %v69_v18 = vadd.f32 1e-12, %v67_v17 }
 0x141   :  { %119 = vrsqrt.f32 %v69_v18 }
 0x14a   :  { %v118_v19 = vpop.eup %117 }
 0x14b   :  { %v72_v21 = vmul.f32 %v118_v19, %v58_v7 }
 0x14d   :  { %v80_v23 = vmul.f32 %v110_v20, %v72_v21 }
 0x14e   :  { %v120_v24 = vpop.eup %119 }
 0x14f   :  { %v73_v25 = vmul.f32 %v120_v24, %v59_v11  ;;  %v88_v26 = vadd.f32 %v111_v22, %v80_v23 }
 0x151   :  { %v81_v27 = vmul.f32 %v110_v20, %v73_v25  ;;  %90 = vst [vmem:[#allocation7] sm:$0xff] %v88_v26 }
 0x153   :  { %v89_v28 = vadd.f32 %v111_v22, %v81_v27 }
 0x155   :  { %91 = vst [vmem:[#allocation7 + $0x8] sm:$0xff] %v89_v28 }
 0x156   :  { %172 = shalt.err (!%p169_p0)
}
 0x157   :  { %103 = dma.vmem_to_hbm [thread:$0]  %s98_s30, 256, %s242_s4, [#allocation4], %s188_s18, %s188_s18, %s189_s19  }
 0x158   :  { %185 = dma.done.wait [#allocation4], 256  }
 0x159   :  { %186 = vsyncadd [#allocation4], 4294967040 }
 0x15a   :  { %107 = vsyncpa [#allocation3], 1 }
 0x15b   :  { %108 = vsyncpa [#allocation6], 1 }
 0x15c   :  { %109 = vsyncpa [#allocation4], 1 }

</bundles_post_ra>
